<compile_context>
chip_gen: v6e
topology: v6e:2x2x1
jax: 0.10.0
libtpu: 0.0.40
codegen_flags: <defaults>
</compile_context>

<pallas_src>
import jax
import jax.numpy as jnp
from jax.experimental import pallas as pl
from jax.experimental.pallas import tpu as pltpu


def simplenet_kernel(xt_ref, w1_ref, b1_ref, w2_ref, b2_ref, o_ref):
    """One batch tile, transposed layout (batch on the lane axis).

    xt_ref: (10, TB) f32  -- x.T tile
    w1_ref: (5, 10)  f32  -- fc1.weight (torch layout)
    b1_ref: (5, 1)   f32  -- fc1.bias as a column
    w2_ref: (5, 1)   f32  -- fc2.weight as a column
    b2_ref: (1, 1)   f32  -- fc2.bias scalar (SMEM)
    o_ref : (1, TB)  f32  -- sigmoid(fc2(relu(fc1(x)))).T tile (lane-dense)
    """
    xt = xt_ref[...]                                      # (10, TB)
    w1 = w1_ref[...]                                      # (5, 10)

    # fc1 via 10 VPU broadcast-FMAs (MXU would be >95% padding at K=10, N=5).
    acc = w1[:, 0:1] * xt[0:1, :]                         # (5, TB)
    for k in range(1, 10):                                # static unroll
        acc = acc + w1[:, k:k + 1] * xt[k:k + 1, :]
    h = jnp.maximum(acc + b1_ref[...], 0.0)               # ReLU, (5, TB)

    # fc2: weighted sublane reduction (XLU) + scalar bias from SMEM.
    y = jnp.sum(h * w2_ref[...], axis=0, keepdims=True)   # (1, TB)
    y = y + b2_ref[0, 0]
    o_ref[...] = jax.nn.sigmoid(y)                        # EUP


def simplenet_forward(x, w1, b1, w2, b2):
    """x: (B, 10). Params in torch layout: w1 (5,10), b1 (5,), w2 (1,5), b2 (1,)."""
    B = x.shape[0]
    # Lane-dense batch tile: multiple of 128, capped so the double-buffered
    # footprint stays tiny even against v7x's smaller VMEM.
    TB = min(2048, pl.cdiv(B, 128) * 128)
    B_pad = pl.cdiv(B, TB) * TB
    n_tiles = B_pad // TB

    # Layout plumbing (wrapper-side): transpose + pad batch to a tile multiple.
    xt = jnp.pad(x.T.astype(jnp.float32), ((0, 0), (0, B_pad - B)))  # (10, B_pad)
    w1k = w1.astype(jnp.float32)                                     # (5, 10)
    b1k = b1.reshape(5, 1).astype(jnp.float32)                       # (5, 1)
    w2k = w2.reshape(5, 1).astype(jnp.float32)                       # (5, 1)
    b2k = b2.reshape(1, 1).astype(jnp.float32)                       # (1, 1)

    out_t = pl.pallas_call(
        simplenet_kernel,
        out_shape=jax.ShapeDtypeStruct((1, B_pad), jnp.float32),
        grid=(n_tiles,),
        in_specs=[
            pl.BlockSpec((10, TB), lambda i: (0, i)),            # stream x.T tiles
            pl.BlockSpec((5, 10), lambda i: (0, 0)),             # resident weights
            pl.BlockSpec((5, 1), lambda i: (0, 0)),
            pl.BlockSpec((5, 1), lambda i: (0, 0)),
            pl.BlockSpec(memory_space=pltpu.MemorySpace.SMEM),   # scalar fc2 bias
        ],
        out_specs=pl.BlockSpec((1, TB), lambda i: (0, i)),
        compiler_params=pltpu.CompilerParams(
            dimension_semantics=("parallel",)),
    )(xt, w1k, b1k, w2k, b2k)

    return out_t[:, :B].T                                        # (B, 1)


def init_params(key):
    # Deterministic init mimicking nn.Linear's uniform(-1/sqrt(fan_in), 1/sqrt(fan_in)).
    k1, k2, k3, k4 = jax.random.split(key, 4)
    lim1 = 1.0 / jnp.sqrt(10.0)
    lim2 = 1.0 / jnp.sqrt(5.0)
    w1 = jax.random.uniform(k1, (5, 10), jnp.float32, -lim1, lim1)   # fc1.weight
    b1 = jax.random.uniform(k2, (5,), jnp.float32, -lim1, lim1)      # fc1.bias
    w2 = jax.random.uniform(k3, (1, 5), jnp.float32, -lim2, lim2)    # fc2.weight
    b2 = jax.random.uniform(k4, (1,), jnp.float32, -lim2, lim2)      # fc2.bias
    return w1, b1, w2, b2


def reference_forward(x, w1, b1, w2, b2):
    h = jnp.maximum(x @ w1.T + b1, 0.0)
    return jax.nn.sigmoid(h @ w2.T + b2)


if __name__ == "__main__":
    key = jax.random.PRNGKey(0)
    kx, kp = jax.random.split(key)

    batch = 8
    x = jax.random.normal(kx, (batch, 10), jnp.float32)
    w1, b1, w2, b2 = init_params(kp)

    out = simplenet_forward(x, w1, b1, w2, b2)
    out = jax.block_until_ready(out)

    ref = reference_forward(x, w1, b1, w2, b2)
    assert out.shape == (batch, 1)
    assert jnp.allclose(out, ref, atol=1e-5, rtol=1e-5)

    print("KERNEL_OK")
</pallas_src>

<mosaic_0001>
module attributes {stable_mosaic.version = 11 : i64} {
  func.func @simplenet_kernel(%arg0: i32, %arg1: memref<10x128xf32, #tpu.memory_space<vmem>>, %arg2: memref<5x10xf32, #tpu.memory_space<vmem>>, %arg3: memref<5x1xf32, #tpu.memory_space<vmem>>, %arg4: memref<5x1xf32, #tpu.memory_space<vmem>>, %arg5: memref<1x1xf32, #tpu.memory_space<smem>>, %arg6: memref<1x128xf32, #tpu.memory_space<vmem>>) attributes {dimension_semantics = [#tpu.dimension_semantics<parallel>], iteration_bounds = array<i64: 1>, scalar_prefetch = 0 : i64, scratch_operands = 0 : i64, tpu.core_type = #tpu.core_type<tc>, window_params = [{transform_indices = @transform_0, window_bounds = array<i64: 10, 128>}, {pipeline_mode = #tpu.pipeline_mode<synchronous>, transform_indices = @transform_1, window_bounds = array<i64: 5, 10>}, {pipeline_mode = #tpu.pipeline_mode<synchronous>, transform_indices = @transform_2, window_bounds = array<i64: 5, 1>}, {pipeline_mode = #tpu.pipeline_mode<synchronous>, transform_indices = @transform_3, window_bounds = array<i64: 5, 1>}, {transform_indices = @transform_4, window_bounds = array<i64: 1, 1>}, {transform_indices = @transform_5, window_bounds = array<i64: 1, 128>}]} {
    %c0 = arith.constant 0 : index
    %c0_0 = arith.constant 0 : index
    %0 = vector.load %arg1[%c0, %c0_0] : memref<10x128xf32, #tpu.memory_space<vmem>>, vector<10x128xf32>
    %c0_1 = arith.constant 0 : index
    %c0_2 = arith.constant 0 : index
    %1 = vector.load %arg2[%c0_1, %c0_2] : memref<5x10xf32, #tpu.memory_space<vmem>>, vector<5x10xf32>
    %2 = vector.extract_strided_slice %1 {offsets = [0, 0], sizes = [5, 1], strides = [1, 1]} : vector<5x10xf32> to vector<5x1xf32>
    %3 = vector.extract_strided_slice %0 {offsets = [0, 0], sizes = [1, 128], strides = [1, 1]} : vector<10x128xf32> to vector<1x128xf32>
    %4 = vector.broadcast %2 : vector<5x1xf32> to vector<5x128xf32>
    %5 = vector.broadcast %3 : vector<1x128xf32> to vector<5x128xf32>
    %6 = arith.mulf %4, %5 : vector<5x128xf32>
    %7 = vector.extract_strided_slice %1 {offsets = [0, 1], sizes = [5, 1], strides = [1, 1]} : vector<5x10xf32> to vector<5x1xf32>
    %8 = vector.extract_strided_slice %0 {offsets = [1, 0], sizes = [1, 128], strides = [1, 1]} : vector<10x128xf32> to vector<1x128xf32>
    %9 = vector.broadcast %7 : vector<5x1xf32> to vector<5x128xf32>
    %10 = vector.broadcast %8 : vector<1x128xf32> to vector<5x128xf32>
    %11 = arith.mulf %9, %10 : vector<5x128xf32>
    %12 = arith.addf %6, %11 : vector<5x128xf32>
    %13 = vector.extract_strided_slice %1 {offsets = [0, 2], sizes = [5, 1], strides = [1, 1]} : vector<5x10xf32> to vector<5x1xf32>
    %14 = vector.extract_strided_slice %0 {offsets = [2, 0], sizes = [1, 128], strides = [1, 1]} : vector<10x128xf32> to vector<1x128xf32>
    %15 = vector.broadcast %13 : vector<5x1xf32> to vector<5x128xf32>
    %16 = vector.broadcast %14 : vector<1x128xf32> to vector<5x128xf32>
    %17 = arith.mulf %15, %16 : vector<5x128xf32>
    %18 = arith.addf %12, %17 : vector<5x128xf32>
    %19 = vector.extract_strided_slice %1 {offsets = [0, 3], sizes = [5, 1], strides = [1, 1]} : vector<5x10xf32> to vector<5x1xf32>
    %20 = vector.extract_strided_slice %0 {offsets = [3, 0], sizes = [1, 128], strides = [1, 1]} : vector<10x128xf32> to vector<1x128xf32>
    %21 = vector.broadcast %19 : vector<5x1xf32> to vector<5x128xf32>
    %22 = vector.broadcast %20 : vector<1x128xf32> to vector<5x128xf32>
    %23 = arith.mulf %21, %22 : vector<5x128xf32>
    %24 = arith.addf %18, %23 : vector<5x128xf32>
    %25 = vector.extract_strided_slice %1 {offsets = [0, 4], sizes = [5, 1], strides = [1, 1]} : vector<5x10xf32> to vector<5x1xf32>
    %26 = vector.extract_strided_slice %0 {offsets = [4, 0], sizes = [1, 128], strides = [1, 1]} : vector<10x128xf32> to vector<1x128xf32>
    %27 = vector.broadcast %25 : vector<5x1xf32> to vector<5x128xf32>
    %28 = vector.broadcast %26 : vector<1x128xf32> to vector<5x128xf32>
    %29 = arith.mulf %27, %28 : vector<5x128xf32>
    %30 = arith.addf %24, %29 : vector<5x128xf32>
    %31 = vector.extract_strided_slice %1 {offsets = [0, 5], sizes = [5, 1], strides = [1, 1]} : vector<5x10xf32> to vector<5x1xf32>
    %32 = vector.extract_strided_slice %0 {offsets = [5, 0], sizes = [1, 128], strides = [1, 1]} : vector<10x128xf32> to vector<1x128xf32>
    %33 = vector.broadcast %31 : vector<5x1xf32> to vector<5x128xf32>
    %34 = vector.broadcast %32 : vector<1x128xf32> to vector<5x128xf32>
    %35 = arith.mulf %33, %34 : vector<5x128xf32>
    %36 = arith.addf %30, %35 : vector<5x128xf32>
    %37 = vector.extract_strided_slice %1 {offsets = [0, 6], sizes = [5, 1], strides = [1, 1]} : vector<5x10xf32> to vector<5x1xf32>
    %38 = vector.extract_strided_slice %0 {offsets = [6, 0], sizes = [1, 128], strides = [1, 1]} : vector<10x128xf32> to vector<1x128xf32>
    %39 = vector.broadcast %37 : vector<5x1xf32> to vector<5x128xf32>
    %40 = vector.broadcast %38 : vector<1x128xf32> to vector<5x128xf32>
    %41 = arith.mulf %39, %40 : vector<5x128xf32>
    %42 = arith.addf %36, %41 : vector<5x128xf32>
    %43 = vector.extract_strided_slice %1 {offsets = [0, 7], sizes = [5, 1], strides = [1, 1]} : vector<5x10xf32> to vector<5x1xf32>
    %44 = vector.extract_strided_slice %0 {offsets = [7, 0], sizes = [1, 128], strides = [1, 1]} : vector<10x128xf32> to vector<1x128xf32>
    %45 = vector.broadcast %43 : vector<5x1xf32> to vector<5x128xf32>
    %46 = vector.broadcast %44 : vector<1x128xf32> to vector<5x128xf32>
    %47 = arith.mulf %45, %46 : vector<5x128xf32>
    %48 = arith.addf %42, %47 : vector<5x128xf32>
    %49 = vector.extract_strided_slice %1 {offsets = [0, 8], sizes = [5, 1], strides = [1, 1]} : vector<5x10xf32> to vector<5x1xf32>
    %50 = vector.extract_strided_slice %0 {offsets = [8, 0], sizes = [1, 128], strides = [1, 1]} : vector<10x128xf32> to vector<1x128xf32>
    %51 = vector.broadcast %49 : vector<5x1xf32> to vector<5x128xf32>
    %52 = vector.broadcast %50 : vector<1x128xf32> to vector<5x128xf32>
    %53 = arith.mulf %51, %52 : vector<5x128xf32>
    %54 = arith.addf %48, %53 : vector<5x128xf32>
    %55 = vector.extract_strided_slice %1 {offsets = [0, 9], sizes = [5, 1], strides = [1, 1]} : vector<5x10xf32> to vector<5x1xf32>
    %56 = vector.extract_strided_slice %0 {offsets = [9, 0], sizes = [1, 128], strides = [1, 1]} : vector<10x128xf32> to vector<1x128xf32>
    %57 = vector.broadcast %55 : vector<5x1xf32> to vector<5x128xf32>
    %58 = vector.broadcast %56 : vector<1x128xf32> to vector<5x128xf32>
    %59 = arith.mulf %57, %58 : vector<5x128xf32>
    %60 = arith.addf %54, %59 : vector<5x128xf32>
    %c0_3 = arith.constant 0 : index
    %c0_4 = arith.constant 0 : index
    %61 = vector.load %arg3[%c0_3, %c0_4] : memref<5x1xf32, #tpu.memory_space<vmem>>, vector<5x1xf32>
    %62 = vector.broadcast %61 : vector<5x1xf32> to vector<5x128xf32>
    %63 = arith.addf %60, %62 : vector<5x128xf32>
    %cst = arith.constant 0.000000e+00 : f32
    %64 = vector.broadcast %cst : f32 to vector<5x128xf32>
    %65 = arith.maximumf %63, %64 : vector<5x128xf32>
    %c0_5 = arith.constant 0 : index
    %c0_6 = arith.constant 0 : index
    %66 = vector.load %arg4[%c0_5, %c0_6] : memref<5x1xf32, #tpu.memory_space<vmem>>, vector<5x1xf32>
    %67 = vector.broadcast %66 : vector<5x1xf32> to vector<5x128xf32>
    %68 = arith.mulf %65, %67 : vector<5x128xf32>
    %cst_7 = arith.constant dense<0.000000e+00> : vector<128xf32>
    %69 = vector.multi_reduction <add>, %68, %cst_7 [0] : vector<5x128xf32> to vector<128xf32>
    %70 = vector.shape_cast %69 : vector<128xf32> to vector<1x128xf32>
    %c0_8 = arith.constant 0 : index
    %c0_9 = arith.constant 0 : index
    %71 = memref.load %arg5[%c0_8, %c0_9] : memref<1x1xf32, #tpu.memory_space<smem>>
    %72 = vector.broadcast %71 : f32 to vector<1x128xf32>
    %73 = arith.addf %70, %72 : vector<1x128xf32>
    %74 = arith.negf %73 : vector<1x128xf32>
    %75 = math.exp %74 : vector<1x128xf32>
    %cst_10 = arith.constant 1.000000e+00 : f32
    %76 = vector.broadcast %cst_10 : f32 to vector<1x128xf32>
    %77 = arith.addf %76, %75 : vector<1x128xf32>
    %78 = arith.divf %76, %77 : vector<1x128xf32>
    %c0_11 = arith.constant 0 : index
    %c0_12 = arith.constant 0 : index
    %79 = vector.load %arg6[%c0_11, %c0_12] : memref<1x128xf32, #tpu.memory_space<vmem>>, vector<1x128xf32>
    tpu.vector_store %arg6[%c0_11, %c0_12], %78 {strides = array<i32>} : memref<1x128xf32, #tpu.memory_space<vmem>>, vector<1x128xf32>,
    return
  }
  func.func @transform_0(%arg0: i32) -> (i32, i32) {
    %c0_i32 = arith.constant 0 : i32
    %c0_i32_0 = arith.constant 0 : i32
    return %c0_i32, %arg0 : i32, i32
  }
  func.func @transform_1(%arg0: i32) -> (i32, i32) {
    %c0_i32 = arith.constant 0 : i32
    %c0_i32_0 = arith.constant 0 : i32
    %c0_i32_1 = arith.constant 0 : i32
    return %c0_i32, %c0_i32_0 : i32, i32
  }
  func.func @transform_2(%arg0: i32) -> (i32, i32) {
    %c0_i32 = arith.constant 0 : i32
    %c0_i32_0 = arith.constant 0 : i32
    %c0_i32_1 = arith.constant 0 : i32
    return %c0_i32, %c0_i32_0 : i32, i32
  }
  func.func @transform_3(%arg0: i32) -> (i32, i32) {
    %c0_i32 = arith.constant 0 : i32
    %c0_i32_0 = arith.constant 0 : i32
    %c0_i32_1 = arith.constant 0 : i32
    return %c0_i32, %c0_i32_0 : i32, i32
  }
  func.func @transform_4(%arg0: i32) -> (i32, i32) {
    %c0_i32 = arith.constant 0 : i32
    %c0_i32_0 = arith.constant 0 : i32
    %c0_i32_1 = arith.constant 0 : i32
    return %c0_i32, %c0_i32_0 : i32, i32
  }
  func.func @transform_5(%arg0: i32) -> (i32, i32) {
    %c0_i32 = arith.constant 0 : i32
    %c0_i32_0 = arith.constant 0 : i32
    return %c0_i32, %arg0 : i32, i32
  }
}

</mosaic_0001>

<bundles_post_ra>
// kernel: tpu_custom_call.1
= control target key start
LH: loop header
LB: loop body
LE: loop exit
PB: predicated region body
PF: predicated region fallthrough
CT: control target
= control target key end

     0   :  { %11 = vsyncpa [#allocation4], 0  ;;  %s321_s0 = inlined_call_operand.vmem [shape: f32[10,128], index: 0, kind: input, shape index: {}]   ;;  %s322_s1 = inlined_call_operand.hbm [shape: f32[5,10], index: 1, kind: input, shape index: {}]   ;;  %s323_s2 = inlined_call_operand.vmem [shape: f32[5,1], index: 2, kind: input, shape index: {}]   ;;  %s324_s3 = inlined_call_operand.vmem [shape: f32[5,1], index: 3, kind: input, shape index: {}]   ;;  %s325_s4 = inlined_call_operand.<no memory space> [shape: f32[1,1], index: 4, kind: input, shape index: {}]   ;;  %s326_s5 = inlined_call_operand.hbm [shape: f32[1,128], index: 5, kind: output, shape index: {}]  }
   0x1   :  { %12 = vsyncpa [#allocation5], 0  ;;  %s258_s18 = smov [#allocation3]  }
   0x2   :  { %s21_s19 = sshll.u32 %s258_s18, 4  ;;  %s22_s19 = int_to_ptr.vmem [resolvable:$true] %s21_s19 }
   0x3   :  { %s222_s20 = scalar_lea.vmem %s22_s19, 128  ;;  %p227_p1 = scmp.lt.s32.totalorder %s22_s19, %s22_s19 }
   0x4   :  { %p223_p0 = scmp.ne.s32.totalorder %s22_s19, %s222_s20  ;;  %p228_p2 = scmp.lt.s32.totalorder %s222_s20, %s222_s20 }
   0x6   :  { %p229_p3 = por %p228_p2, %p227_p1 }
   0x8   :  { %p230_p4 = pnand %p229_p3, %p223_p0 }
   0xa   :  { %233 = shalt.err (!%p230_p4)
}
   0xb   :  { %24 = dma.hbm_to_vmem [thread:$0]  %s322_s1, 128, %s22_s19, [#allocation4]  }
   0xc   :  { %254 = dma.done.wait [#allocation4], 128  }
   0xd   :  { %255 = vsyncadd [#allocation4], 4294967168  ;;  %v259_v0 = vmov 2   ;;  %v260_v1 = vmov 0   ;;  %v36_v2 = vld [vmem:[#allocation3] sm:$0x1f]  ;;  %v42_v13 = vlaneseq }
   0xe   :  { %200 = vset.pattern.permute.xlu1 %v259_v0  ;;  %198 = vset.pattern.permute.xlu0 %v260_v1  ;;  %v261_v3 = vmov 3   ;;  %v262_v4 = vmov 1   ;;  %v263_v5 = vmov 4   ;;  %v264_v6 = vmov 5   ;;  %v145_v9 = vld [vmem:[%s324_s3] sm:$0x1f] }
   0xf   :  { %58 = vperm.xlu1 %200, %v36_v2   ;;  %39 = vperm.xlu0 %198, %v36_v2   ;;  %v265_v7 = vmov 6   ;;  %v266_v8 = vmov 8   ;;  %v267_v10 = vmov 7   ;;  %v268_v11 = vmov 9   ;;  %v137_v12 = vld [vmem:[%s323_s2] sm:$0x1f] }
  0x10   :  { %v43_v14 = vshrl.u32 %v42_v13, 7  ;;  %v34_v17 = vld [vmem:[%s321_s0] sm:$0xff]  ;;  %v35_v47 = vld [vmem:[%s321_s0 + $0x8] sm:$0x3]  ;;  %vm152_vm0 = vcmask 1044480   ;;  %s269_s29 = smov [#allocation6]  }
  0x11   :  { %s176_s30 = sshll.u32 %s269_s29, 4  ;;  %s177_s30 = int_to_ptr.vmem [resolvable:$true] %s176_s30 }
  0x12   :  { %v44_v15 = vsub.s32 0, %v43_v14  ;;  %v53_v16 = vsub.s32 1, %v43_v14  ;;  %v63_v18 = vsub.s32 2, %v43_v14  ;;  %v73_v22 = vsub.s32 3, %v43_v14  ;;  %s234_s6 = scalar_lea.vmem %s177_s30, 16  ;;  %s238_s7 = scalar_lea.vmem %s177_s30, 32 }
  0x13   :  { %201 = vset.pattern.permute.xlu1 %v261_v3  ;;  %199 = vset.pattern.permute.xlu0 %v262_v4  ;;  %v83_v24 = vsub.s32 4, %v43_v14  ;;  %v93_v29 = vsub.s32 5, %v43_v14  ;;  %v103_v36 = vsub.s32 6, %v43_v14  ;;  %v113_v45 = vsub.s32 7, %v43_v14  ;;  %p235_p5 = scmp.ne.s32.totalorder %s177_s30, %s234_s6  ;;  %p239_p6 = scmp.lt.s32.totalorder %s177_s30, %s177_s30 }
  0x14   :  { %68 = vperm.xlu1 %201, %v36_v2   ;;  %48 = vperm.xlu0 %199, %v36_v2   ;;  %v45_v21 = vrot.slane %v34_v17, %v44_v15  ;;  %v54_v23 = vrot.slane %v34_v17, %v53_v16  ;;  %v64_v25 = vrot.slane %v34_v17, %v63_v18  ;;  %p240_p7 = scmp.lt.s32.totalorder %s238_s7, %s234_s6 }
  0x15   :  { %v74_v30 = vrot.slane %v34_v17, %v73_v22  ;;  %v84_v32 = vrot.slane %v34_v17, %v83_v24  ;;  %v94_v35 = vrot.slane %v34_v17, %v93_v29  ;;  %v104_v44 = vrot.slane %v34_v17, %v103_v36 }
  0x16   :  { %v114_v51 = vrot.slane %v34_v17, %v113_v45  ;;  %v124_v52 = vrot.slane %v35_v47, %v44_v15  ;;  %v134_v58 = vrot.slane %v35_v47, %v53_v16  ;;  %p241_p8 = por %p240_p7, %p239_p6 }
  0x18   :  { %202 = vset.pattern.permute.xlu1 %v263_v5  ;;  %203 = vset.pattern.permute.xlu0 %v264_v6  ;;  %p242_p9 = pnand %p241_p8, %p235_p5 }
  0x19   :  { %78 = vperm.xlu1 %202, %v36_v2   ;;  %88 = vperm.xlu0 %203, %v36_v2  }
  0x1d   :  { %204 = vset.pattern.permute.xlu1 %v265_v7  ;;  %206 = vset.pattern.permute.xlu0 %v266_v8 }
  0x1e   :  { %98 = vperm.xlu1 %204, %v36_v2   ;;  %118 = vperm.xlu0 %206, %v36_v2  }
  0x22   :  { %205 = vset.pattern.permute.xlu1 %v267_v10  ;;  %209 = vset.pattern.permute.xlu0 %v260_v1 }
  0x23   :  { %108 = vperm.xlu1 %205, %v36_v2   ;;  %148 = vperm.xlu0 %209, %v145_v9  }
  0x27   :  { %207 = vset.pattern.permute.xlu1 %v268_v11  ;;  %v161_v11 = vstv %s325_s4 }
  0x28   :  { %128 = vperm.xlu1 %207, %v36_v2  }
  0x2c   :  { %208 = vset.pattern.permute.xlu1 %v260_v1 }
  0x2d   :  { %140 = vperm.xlu1 %208, %v137_v12  }
  0x8a   :  { %v59_v19 = vpop.permute.xlu1 %58  ;;  %v40_v20 = vpop.permute.xlu0 %39 }
  0x8b   :  { %v46_v26 = vmul.f32 %v45_v21, %v40_v20  ;;  %v65_v33 = vmul.f32 %v64_v25, %v59_v19 }
  0x8f   :  { %v69_v27 = vpop.permute.xlu1 %68  ;;  %v49_v28 = vpop.permute.xlu0 %48 }
  0x90   :  { %v55_v31 = vmul.f32 %v54_v23, %v49_v28  ;;  %v75_v37 = vmul.f32 %v74_v30, %v69_v27 }
  0x92   :  { %v56_v34 = vadd.f32 %v55_v31, %v46_v26 }
  0x94   :  { %v66_v38 = vadd.f32 %v65_v33, %v56_v34  ;;  %v79_v39 = vpop.permute.xlu1 %78  ;;  %v89_v40 = vpop.permute.xlu0 %88 }
  0x95   :  { %v85_v41 = vmul.f32 %v84_v32, %v79_v39  ;;  %v95_v43 = vmul.f32 %v94_v35, %v89_v40 }
  0x96   :  { %v76_v42 = vadd.f32 %v75_v37, %v66_v38 }
  0x98   :  { %v86_v46 = vadd.f32 %v85_v41, %v76_v42 }
  0x99   :  { %v99_v48 = vpop.permute.xlu1 %98  ;;  %v119_v53 = vpop.permute.xlu0 %118 }
  0x9a   :  { %v96_v49 = vadd.f32 %v95_v43, %v86_v46  ;;  %v105_v50 = vmul.f32 %v104_v44, %v99_v48  ;;  %v125_v57 = vmul.f32 %v124_v52, %v119_v53 }
  0x9c   :  { %v106_v55 = vadd.f32 %v105_v50, %v96_v49 }
  0x9e   :  { %v109_v54 = vpop.permute.xlu1 %108  ;;  %v149_v2 = vpop.permute.xlu0 %148 }
  0x9f   :  { %v115_v56 = vmul.f32 %v114_v51, %v109_v54 }
  0xa1   :  { %v116_v59 = vadd.f32 %v115_v56, %v106_v55 }
  0xa3   :  { %v126_v60 = vadd.f32 %v125_v57, %v116_v59  ;;  %v129_v61 = vpop.permute.xlu1 %128 }
  0xa4   :  { %v135_v62 = vmul.f32 %v134_v58, %v129_v61 }
  0xa6   :  { %v136_v63 = vadd.f32 %v135_v62, %v126_v60 }
  0xa8   :  { %v141_v0 = vpop.permute.xlu1 %140 }
  0xa9   :  { %v143_v1 = vadd.f32 %v141_v0, %v136_v63 }
  0xab   :  { %v144_v3 = vmax.f32 %v143_v1, 0.0 }
  0xad   :  { %v151_v4 = vmul.f32 %v149_v2, %v144_v3 }
  0xaf   :  { %v153_v5 = vsel %vm152_vm0, %v151_v4, 0.0 }
  0xb0   :  { %v154_v6 = vrot.slane %v153_v5, 4 }
  0xb2   :  { %v155_v7 = vadd.f32 %v154_v6, %v153_v5 }
  0xb4   :  { %v156_v8 = vrot.slane %v155_v7, 2 }
  0xb6   :  { %v157_v9 = vadd.f32 %v156_v8, %v155_v7 }
  0xb8   :  { %v158_v10 = vrot.slane %v157_v9, 1 }
  0xba   :  { %v159_v12 = vadd.f32 %v158_v10, %v157_v9 }
  0xbc   :  { %v162_v13 = vadd.f32 %v161_v11, %v159_v12 }
  0xbe   :  { %v185_v14 = vmul.f32 -1.442695, %v162_v13 }
  0xc0   :  { %210 = vpow2.f32 %v185_v14 }
  0xcd   :  { %v211_v15 = vpop.eup %210 }
  0xce   :  { %v166_v16 = vadd.f32 1.0, %v211_v15 }
  0xd0   :  { %212 = vrcp.f32 %v166_v16 }
  0xdd   :  { %v213_v17 = vpop.eup %212 }
  0xde   :  { %169 = vst [vmem:[#allocation6] sm:$0x1] %v213_v17 }
  0xdf   :  { %245 = shalt.err (!%p242_p9)
}
  0xe0   :  { %179 = dma.vmem_to_hbm [thread:$0]  %s177_s30, 16, %s326_s5, [#allocation5]  }
  0xe1   :  { %256 = dma.done.wait [#allocation5], 16  }
  0xe2   :  { %257 = vsyncadd [#allocation5], 4294967280 }
  0xe3   :  { %183 = vsyncpa [#allocation4], 1 }
  0xe4   :  { %184 = vsyncpa [#allocation5], 1 }

</bundles_post_ra>
